<compile_context>
chip_gen: v5e
topology: v5e:2x2
jax: 0.10.0
libtpu: 0.0.40
codegen_flags: <defaults>
</compile_context>

<pallas_src>
import functools

import numpy as np
import jax
import jax.numpy as jnp
from jax import lax
from jax.experimental import pallas as pl
from jax.experimental.pallas import tpu as pltpu

KS = 5       # conv kernel size
PAD = 2      # reflection padding
SCALE = 2    # nearest-upsample factor
EPS = 1e-5   # InstanceNorm eps (PyTorch default)


def _upsample_reflect_map(n):
    """Padded-upsampled position p in [0, SCALE*n + 2*PAD) -> original index."""
    ups = np.repeat(np.arange(n), SCALE)          # upsampled index -> original index
    left = ups[PAD:0:-1]                          # reflect pad (left)
    right = ups[-2:-2 - PAD:-1]                   # reflect pad (right)
    return np.concatenate([left, ups, right])


def _selection_constants(H, W):
    """0/1 selection matrices folding upsample + reflect-pad + conv tap shifts."""
    H2, W2 = SCALE * H, SCALE * W
    rmap = _upsample_reflect_map(H)               # (H2 + 2*PAD,)
    cmap = _upsample_reflect_map(W)               # (W2 + 2*PAD,)

    # gh[p, r] = 1 iff padded-upsampled row p reads original row r
    gh = (rmap[:, None] == np.arange(H)[None, :]).astype(np.float32)        # (H2+4, H)
    # acat[y, kh*H + r] = gh[y + kh, r]  (row gather for all KS kh-taps, side by side)
    acat = np.concatenate([gh[kh:kh + H2, :] for kh in range(KS)], axis=1)  # (H2, KS*H)

    # gw[c, q] = 1 iff padded-upsampled col q reads original col c
    gw = (np.arange(W)[:, None] == cmap[None, :]).astype(np.float32)        # (W, W2+4)
    # gwk[kw, c, x] = gw[c, x + kw]  (column gather shifted by tap kw)
    gwk = np.stack([gw[:, kw:kw + W2] for kw in range(KS)], axis=0)         # (KS, W, W2)
    return acat, gwk


def upconv_kernel(xr_ref, bfull_ref, acat_ref, pm_ref, out_ref):
    """Fused per-batch-item kernel.

    xr_ref:    (1, H, Cin*W)            input with channels folded into the lane axis
    bfull_ref: (KS, Cin*W, Cout*W2)     conv weights folded with the column selection
    acat_ref:  (H2, KS*H)               row selection (upsample + pad + kh taps)
    pm_ref:    (Cout*W2, Cout*W2)       per-channel lane averaging (includes 1/npix)
    out_ref:   (1, H2, Cout*W2)         lane-dense output block
    """
    xr = xr_ref[0]                                   # (H, Cin*W)

    # Stage 1: upsample + reflect-pad along W, the Cin contraction and the kw taps,
    # all pre-folded into bfull -> KS MXU matmuls with K = Cin*W, N = Cout*W2.
    t_parts = [jnp.dot(xr, bfull_ref[kh], preferred_element_type=jnp.float32)
               for kh in range(KS)]                  # KS x (H, Cout*W2)
    tcat = jnp.concatenate(t_parts, axis=0)          # (KS*H, Cout*W2), sublane stack

    # Stage 2: upsample + reflect-pad along H + the kh taps in a single matmul.
    o = jnp.dot(acat_ref[...], tcat,
                preferred_element_type=jnp.float32)  # (H2, Cout*W2)

    # InstanceNorm (affine=False, biased variance), single pass, vectorized over
    # channels.  pm averages lanes within each W2-wide channel block and divides by
    # npix, so a sublane-sum afterwards yields per-channel E[x] / E[x^2] replicated
    # across that channel's lanes.
    pm = pm_ref[...]
    mean_l = jnp.sum(jnp.dot(o, pm, preferred_element_type=jnp.float32),
                     axis=0, keepdims=True)          # (1, Cout*W2)  per-channel mean
    e2_l = jnp.sum(jnp.dot(o * o, pm, preferred_element_type=jnp.float32),
                   axis=0, keepdims=True)            # (1, Cout*W2)  per-channel E[x^2]
    var_l = e2_l - mean_l * mean_l
    o = (o - mean_l) * lax.rsqrt(var_l + EPS)

    # ReLU + single lane-dense store (last dim = Cout*W2 = 128 -> unmasked vst).
    out_ref[0] = jnp.maximum(o, 0.0).astype(out_ref.dtype)


@jax.jit
def upconv2d_block(x_nchw, weight, bias=None):
    """Forward of UpConv2dBlock.  x: (N, C, H, W) -> (N, C//2, 2H, 2W)."""
    N, C, H, W = x_nchw.shape
    Cout = weight.shape[0]
    assert weight.shape == (Cout, C, KS, KS)
    H2, W2 = SCALE * H, SCALE * W
    # Fast-path layout invariants for this config (other shapes stay correct but
    # would fall back to masked partial stores / padded matmuls):
    #   C*W == 128 (stage-1 K), Cout*W2 == 128 (lane-dense output), H % 8 == 0.

    acat_np, gwk_np = _selection_constants(H, W)
    acat = jnp.asarray(acat_np)

    # Fold the 5x5 conv weights + Cin contraction + kw column selection into KS
    # weight matrices: bfull[kh, ci*W + c, co*W2 + x] = sum_kw w[co,ci,kh,kw]*gwk[kw,c,x]
    bfull = jnp.einsum('oihw,wcx->hicox', weight.astype(jnp.float32),
                       jnp.asarray(gwk_np)).reshape(KS, C * W, Cout * W2)

    # Per-channel lane-group averaging matrix for InstanceNorm stats.
    lane = np.arange(Cout * W2)
    pm = jnp.asarray((lane[:, None] // W2 == lane[None, :] // W2)
                     .astype(np.float32) / float(H2 * W2))

    # x: (N, C, H, W) -> (N, H, C*W): channels join the lane axis (tiny XLA transpose).
    x_r = jnp.transpose(x_nchw, (0, 2, 1, 3)).reshape(N, H, C * W)

    # NOTE: bias intentionally unused - InstanceNorm(affine=False) subtracts the
    # per-channel spatial mean, which cancels a constant per-channel bias exactly.
    del bias

    out2d = pl.pallas_call(
        upconv_kernel,
        out_shape=jax.ShapeDtypeStruct((N, H2, Cout * W2), x_nchw.dtype),
        grid_spec=pltpu.PrefetchScalarGridSpec(
            num_scalar_prefetch=0,
            grid=(N,),
            in_specs=[
                pl.BlockSpec((1, H, C * W), lambda n: (n, 0, 0)),
                pl.BlockSpec((KS, C * W, Cout * W2), lambda n: (0, 0, 0)),
                pl.BlockSpec((H2, KS * H), lambda n: (0, 0)),
                pl.BlockSpec((Cout * W2, Cout * W2), lambda n: (0, 0)),
            ],
            out_specs=pl.BlockSpec((1, H2, Cout * W2), lambda n: (n, 0, 0)),
        ),
        compiler_params=pltpu.CompilerParams(
            dimension_semantics=("parallel",)),
    )(x_r, bfull, acat, pm)

    # (N, H2, Cout*W2) -> (N, Cout, H2, W2) NCHW.
    # TODO(synk): skip this transpose if the consumer can take (N, H2, Cout, W2).
    return out2d.reshape(N, H2, Cout, W2).transpose(0, 2, 1, 3)


def reference(x_nchw, weight, bias):
    """Pure-JAX reference (includes the bias, which the kernel provably drops)."""
    x = jnp.repeat(jnp.repeat(x_nchw, SCALE, axis=2), SCALE, axis=3)
    x = jnp.pad(x, ((0, 0), (0, 0), (PAD, PAD), (PAD, PAD)), mode="reflect")
    y = lax.conv_general_dilated(
        x, weight, window_strides=(1, 1), padding="VALID",
        dimension_numbers=("NCHW", "OIHW", "NCHW"))
    y = y + bias.reshape(1, -1, 1, 1)
    mean = jnp.mean(y, axis=(2, 3), keepdims=True)
    var = jnp.mean((y - mean) ** 2, axis=(2, 3), keepdims=True)
    y = (y - mean) * lax.rsqrt(var + EPS)
    return jnp.maximum(y, 0.0)


if __name__ == "__main__":
    # UpConv2dBlock(dim=8): in_dim=8 -> out_dim=4, 5x5 conv, reflect pad 2, 'in' norm, relu
    N, dim, H, W = 2, 8, 16, 16
    cout = dim // 2

    key = jax.random.PRNGKey(0)
    kx, kw_, kb = jax.random.split(key, 3)
    x = jax.random.normal(kx, (N, dim, H, W), dtype=jnp.float32)
    weight = 0.1 * jax.random.normal(kw_, (cout, dim, KS, KS), dtype=jnp.float32)
    bias = 0.1 * jax.random.normal(kb, (cout,), dtype=jnp.float32)

    out = jax.block_until_ready(upconv2d_block(x, weight, bias))
    ref = jax.block_until_ready(reference(x, weight, bias))

    assert out.shape == (N, cout, SCALE * H, SCALE * W), out.shape
    err = float(jnp.max(jnp.abs(out - ref)))
    assert jnp.allclose(out, ref, rtol=1e-4, atol=1e-4), err

    print("KERNEL_OK")
</pallas_src>

<mosaic_0001>
module attributes {stable_mosaic.version = 11 : i64} {
  func.func @upconv_kernel(%arg0: i32, %arg1: memref<1x16x128xf32, #tpu.memory_space<vmem>>, %arg2: memref<5x128x128xf32, #tpu.memory_space<vmem>>, %arg3: memref<32x80xf32, #tpu.memory_space<vmem>>, %arg4: memref<128x128xf32, #tpu.memory_space<vmem>>, %arg5: memref<1x32x128xf32, #tpu.memory_space<vmem>>) attributes {dimension_semantics = [#tpu.dimension_semantics<parallel>], iteration_bounds = array<i64: 2>, scalar_prefetch = 0 : i64, scratch_operands = 0 : i64, tpu.core_type = #tpu.core_type<tc>, window_params = [{transform_indices = @transform_0, window_bounds = array<i64: 1, 16, 128>}, {pipeline_mode = #tpu.pipeline_mode<synchronous>, transform_indices = @transform_1, window_bounds = array<i64: 5, 128, 128>}, {pipeline_mode = #tpu.pipeline_mode<synchronous>, transform_indices = @transform_2, window_bounds = array<i64: 32, 80>}, {pipeline_mode = #tpu.pipeline_mode<synchronous>, transform_indices = @transform_3, window_bounds = array<i64: 128, 128>}, {transform_indices = @transform_4, window_bounds = array<i64: 1, 32, 128>}]} {
    %c0 = arith.constant 0 : index
    %c0_0 = arith.constant 0 : index
    %c0_1 = arith.constant 0 : index
    %0 = vector.load %arg1[%c0, %c0_0, %c0_1] : memref<1x16x128xf32, #tpu.memory_space<vmem>>, vector<1x16x128xf32>
    %1 = vector.shape_cast %0 : vector<1x16x128xf32> to vector<16x128xf32>
    %c0_2 = arith.constant 0 : index
    %c0_3 = arith.constant 0 : index
    %c0_4 = arith.constant 0 : index
    %2 = vector.load %arg2[%c0_2, %c0_3, %c0_4] : memref<5x128x128xf32, #tpu.memory_space<vmem>>, vector<1x128x128xf32>
    %3 = vector.shape_cast %2 : vector<1x128x128xf32> to vector<128x128xf32>
    %cst = arith.constant dense<0.000000e+00> : vector<16x128xf32>
    %4 = tpu.matmul %1, %3, %cst {dimension_numbers = #tpu.dot_dimension_numbers<[1], [0], [0], [1], [0, 0, 1, 1], [], []>} : vector<16x128xf32>, vector<128x128xf32>, vector<16x128xf32> -> vector<16x128xf32>
    %c1 = arith.constant 1 : index
    %c0_5 = arith.constant 0 : index
    %c0_6 = arith.constant 0 : index
    %5 = vector.load %arg2[%c1, %c0_5, %c0_6] : memref<5x128x128xf32, #tpu.memory_space<vmem>>, vector<1x128x128xf32>
    %6 = vector.shape_cast %5 : vector<1x128x128xf32> to vector<128x128xf32>
    %cst_7 = arith.constant dense<0.000000e+00> : vector<16x128xf32>
    %7 = tpu.matmul %1, %6, %cst_7 {dimension_numbers = #tpu.dot_dimension_numbers<[1], [0], [0], [1], [0, 0, 1, 1], [], []>} : vector<16x128xf32>, vector<128x128xf32>, vector<16x128xf32> -> vector<16x128xf32>
    %c2 = arith.constant 2 : index
    %c0_8 = arith.constant 0 : index
    %c0_9 = arith.constant 0 : index
    %8 = vector.load %arg2[%c2, %c0_8, %c0_9] : memref<5x128x128xf32, #tpu.memory_space<vmem>>, vector<1x128x128xf32>
    %9 = vector.shape_cast %8 : vector<1x128x128xf32> to vector<128x128xf32>
    %cst_10 = arith.constant dense<0.000000e+00> : vector<16x128xf32>
    %10 = tpu.matmul %1, %9, %cst_10 {dimension_numbers = #tpu.dot_dimension_numbers<[1], [0], [0], [1], [0, 0, 1, 1], [], []>} : vector<16x128xf32>, vector<128x128xf32>, vector<16x128xf32> -> vector<16x128xf32>
    %c3 = arith.constant 3 : index
    %c0_11 = arith.constant 0 : index
    %c0_12 = arith.constant 0 : index
    %11 = vector.load %arg2[%c3, %c0_11, %c0_12] : memref<5x128x128xf32, #tpu.memory_space<vmem>>, vector<1x128x128xf32>
    %12 = vector.shape_cast %11 : vector<1x128x128xf32> to vector<128x128xf32>
    %cst_13 = arith.constant dense<0.000000e+00> : vector<16x128xf32>
    %13 = tpu.matmul %1, %12, %cst_13 {dimension_numbers = #tpu.dot_dimension_numbers<[1], [0], [0], [1], [0, 0, 1, 1], [], []>} : vector<16x128xf32>, vector<128x128xf32>, vector<16x128xf32> -> vector<16x128xf32>
    %c4 = arith.constant 4 : index
    %c0_14 = arith.constant 0 : index
    %c0_15 = arith.constant 0 : index
    %14 = vector.load %arg2[%c4, %c0_14, %c0_15] : memref<5x128x128xf32, #tpu.memory_space<vmem>>, vector<1x128x128xf32>
    %15 = vector.shape_cast %14 : vector<1x128x128xf32> to vector<128x128xf32>
    %cst_16 = arith.constant dense<0.000000e+00> : vector<16x128xf32>
    %16 = tpu.matmul %1, %15, %cst_16 {dimension_numbers = #tpu.dot_dimension_numbers<[1], [0], [0], [1], [0, 0, 1, 1], [], []>} : vector<16x128xf32>, vector<128x128xf32>, vector<16x128xf32> -> vector<16x128xf32>
    %17 = tpu.concatenate %4, %7, %10, %13, %16 in 0 : vector<16x128xf32>, vector<16x128xf32>, vector<16x128xf32>, vector<16x128xf32>, vector<16x128xf32> -> vector<80x128xf32>
    %c0_17 = arith.constant 0 : index
    %c0_18 = arith.constant 0 : index
    %18 = vector.load %arg3[%c0_17, %c0_18] : memref<32x80xf32, #tpu.memory_space<vmem>>, vector<32x80xf32>
    %cst_19 = arith.constant dense<0.000000e+00> : vector<32x128xf32>
    %19 = tpu.matmul %18, %17, %cst_19 {dimension_numbers = #tpu.dot_dimension_numbers<[1], [0], [0], [1], [0, 0, 1, 1], [], []>} : vector<32x80xf32>, vector<80x128xf32>, vector<32x128xf32> -> vector<32x128xf32>
    %c0_20 = arith.constant 0 : index
    %c0_21 = arith.constant 0 : index
    %20 = vector.load %arg4[%c0_20, %c0_21] : memref<128x128xf32, #tpu.memory_space<vmem>>, vector<128x128xf32>
    %cst_22 = arith.constant dense<0.000000e+00> : vector<32x128xf32>
    %21 = tpu.matmul %19, %20, %cst_22 {dimension_numbers = #tpu.dot_dimension_numbers<[1], [0], [0], [1], [0, 0, 1, 1], [], []>} : vector<32x128xf32>, vector<128x128xf32>, vector<32x128xf32> -> vector<32x128xf32>
    %cst_23 = arith.constant dense<0.000000e+00> : vector<128xf32>
    %22 = vector.multi_reduction <add>, %21, %cst_23 [0] : vector<32x128xf32> to vector<128xf32>
    %23 = vector.shape_cast %22 : vector<128xf32> to vector<1x128xf32>
    %24 = arith.mulf %19, %19 : vector<32x128xf32>
    %cst_24 = arith.constant dense<0.000000e+00> : vector<32x128xf32>
    %25 = tpu.matmul %24, %20, %cst_24 {dimension_numbers = #tpu.dot_dimension_numbers<[1], [0], [0], [1], [0, 0, 1, 1], [], []>} : vector<32x128xf32>, vector<128x128xf32>, vector<32x128xf32> -> vector<32x128xf32>
    %cst_25 = arith.constant dense<0.000000e+00> : vector<128xf32>
    %26 = vector.multi_reduction <add>, %25, %cst_25 [0] : vector<32x128xf32> to vector<128xf32>
    %27 = vector.shape_cast %26 : vector<128xf32> to vector<1x128xf32>
    %28 = arith.mulf %23, %23 : vector<1x128xf32>
    %29 = arith.subf %27, %28 : vector<1x128xf32>
    %30 = vector.broadcast %23 : vector<1x128xf32> to vector<32x128xf32>
    %31 = arith.subf %19, %30 : vector<32x128xf32>
    %cst_26 = arith.constant 9.99999974E-6 : f32
    %32 = vector.broadcast %cst_26 : f32 to vector<1x128xf32>
    %33 = arith.addf %29, %32 : vector<1x128xf32>
    %34 = math.rsqrt %33 : vector<1x128xf32>
    %35 = vector.broadcast %34 : vector<1x128xf32> to vector<32x128xf32>
    %36 = arith.mulf %31, %35 : vector<32x128xf32>
    %cst_27 = arith.constant 0.000000e+00 : f32
    %37 = vector.broadcast %cst_27 : f32 to vector<32x128xf32>
    %38 = arith.maximumf %36, %37 : vector<32x128xf32>
    %c0_28 = arith.constant 0 : index
    %c0_29 = arith.constant 0 : index
    %c0_30 = arith.constant 0 : index
    %39 = vector.load %arg5[%c0_28, %c0_29, %c0_30] : memref<1x32x128xf32, #tpu.memory_space<vmem>>, vector<1x32x128xf32>
    %40 = vector.shape_cast %39 : vector<1x32x128xf32> to vector<32x128xf32>
    %41 = vector.shape_cast %38 : vector<32x128xf32> to vector<1x32x128xf32>
    tpu.vector_store %arg5[%c0_28, %c0_29, %c0_30], %41 {strides = array<i32>} : memref<1x32x128xf32, #tpu.memory_space<vmem>>, vector<1x32x128xf32>,
    return
  }
  func.func @transform_0(%arg0: i32) -> (i32, i32, i32) {
    %c0_i32 = arith.constant 0 : i32
    %c0_i32_0 = arith.constant 0 : i32
    %c0_i32_1 = arith.constant 0 : i32
    return %arg0, %c0_i32, %c0_i32_0 : i32, i32, i32
  }
  func.func @transform_1(%arg0: i32) -> (i32, i32, i32) {
    %c0_i32 = arith.constant 0 : i32
    %c0_i32_0 = arith.constant 0 : i32
    %c0_i32_1 = arith.constant 0 : i32
    %c0_i32_2 = arith.constant 0 : i32
    return %c0_i32, %c0_i32_0, %c0_i32_1 : i32, i32, i32
  }
  func.func @transform_2(%arg0: i32) -> (i32, i32) {
    %c0_i32 = arith.constant 0 : i32
    %c0_i32_0 = arith.constant 0 : i32
    %c0_i32_1 = arith.constant 0 : i32
    return %c0_i32, %c0_i32_0 : i32, i32
  }
  func.func @transform_3(%arg0: i32) -> (i32, i32) {
    %c0_i32 = arith.constant 0 : i32
    %c0_i32_0 = arith.constant 0 : i32
    %c0_i32_1 = arith.constant 0 : i32
    return %c0_i32, %c0_i32_0 : i32, i32
  }
  func.func @transform_4(%arg0: i32) -> (i32, i32, i32) {
    %c0_i32 = arith.constant 0 : i32
    %c0_i32_0 = arith.constant 0 : i32
    %c0_i32_1 = arith.constant 0 : i32
    return %arg0, %c0_i32, %c0_i32_0 : i32, i32, i32
  }
}

</mosaic_0001>

<bundles_post_ra>
// kernel: upconv2d_block.1
= control target key start
LH: loop header
LB: loop body
LE: loop exit
PB: predicated region body
PF: predicated region fallthrough
CT: control target
= control target key end

     0   :  { %s749_s15 = smov 0   ;;  %s1095_s0 = inlined_call_operand.vmem [shape: f32[2,16,128], index: 0, kind: input, shape index: {}]   ;;  %s1096_s1 = inlined_call_operand.vmem [shape: f32[5,128,128], index: 1, kind: input, shape index: {}]   ;;  %s1097_s2 = inlined_call_operand.vmem [shape: f32[32,80], index: 2, kind: input, shape index: {}]   ;;  %s1098_s3 = inlined_call_operand.vmem [shape: f32[128,128], index: 3, kind: input, shape index: {}]   ;;  %s1099_s4 = inlined_call_operand.vmem [shape: f32[2,32,128], index: 4, kind: output, shape index: {}]  }
   0x1 LB: > { %s625_s16 = sadd.s32 4294967295, %s722_s15   ;;  %p629_p0 = scmp.ge.s32.totalorder %s722_s15, 1  ;;  %s722_s15 = sphi %s749_s15, %s14_s15  }
   0x2   : > { %p162_p1 = scmp.lt.s32.totalorder %s722_s15, 3 }
   0x4   : > { %p163_p2 = pnand %p629_p0, %p162_p1 }
   0x5   : > { %p840_p3 = scmp.lt.s32.totalorder (!%p163_p2), %s625_s16, 1 }
   0x6   : > { %166 = sbr.rel (%p163_p2) target bundleno = 556 (0x22c), region = 36 }
   0xb   : > { %v215_v0 = vld [vmem:[%s1096_s1 + $0x78] sm:$0xff]  ;;  %v214_v1 = vld [vmem:[%s1096_s1 + $0x70] sm:$0xff]  ;;  %v213_v2 = vld [vmem:[%s1096_s1 + $0x68] sm:$0xff]  ;;  %s1102_s16 = smov (!%p840_p3, %s625_s16), 1  ;;  %vm403_vm0 = vcmask 654336  }
   0xc   : > { %216 = vmatpush.msra.mxu0 %v215_v0  ;;  %v212_v3 = vld [vmem:[%s1096_s1 + $0x60] sm:$0xff]  ;;  %v681_v4 = vld [vmem:[%s1096_s1 + $0x1f8] sm:$0xff]  ;;  %v680_v5 = vld [vmem:[%s1096_s1 + $0x1f0] sm:$0xff]  ;;  %s704_s30 = sshll.u32 %s1102_s16, 4  ;;  %s705_s5 = sshll.u32 %s1102_s16, 5 }
   0xd   : > { %v211_v6 = vld [vmem:[%s1096_s1 + $0x58] sm:$0xff]  ;;  %336 = vmatpush.msra.mxu3 %v681_v4  ;;  %v679_v8 = vld [vmem:[%s1096_s1 + $0x1e8] sm:$0xff]  ;;  %v664_v9 = vld [vmem:[%s1096_s1 + $0x170] sm:$0xff]  ;;  %s917_s21 = scalar_lea.vmem %s1095_s0, %s704_s30  ;;  %s197_s8 = scalar_lea.vmem %s1099_s4, %s705_s5 }
   0xe   : > { %217 = vmatpush.msra.mxu0 %v214_v1  ;;  %v665_v7 = vld [vmem:[%s1096_s1 + $0x178] sm:$0xff]  ;;  %v210_v10 = vld [vmem:[%s1096_s1 + $0x50] sm:$0xff]  ;;  %v663_v11 = vld [vmem:[%s1096_s1 + $0x168] sm:$0xff] }
   0xf   : > { %296 = vmatpush.msra.mxu2 %v665_v7  ;;  %337 = vmatpush.msra.mxu3 %v680_v5  ;;  %v678_v12 = vld [vmem:[%s1096_s1 + $0x1e0] sm:$0xff]  ;;  %v209_v13 = vld [vmem:[%s1096_s1 + $0x48] sm:$0xff]  ;;  %v677_v15 = vld [vmem:[%s1096_s1 + $0x1d8] sm:$0xff] }
  0x10   : > { %218 = vmatpush.msra.mxu0 %v213_v2  ;;  %v662_v14 = vld [vmem:[%s1096_s1 + $0x160] sm:$0xff]  ;;  %v649_v16 = vld [vmem:[%s1096_s1 + $0xf8] sm:$0xff]  ;;  %v648_v19 = vld [vmem:[%s1096_s1 + $0xf0] sm:$0xff] }
  0x11   : > { %297 = vmatpush.msra.mxu2 %v664_v9  ;;  %338 = vmatpush.msra.mxu3 %v679_v8  ;;  %v208_v17 = vld [vmem:[%s1096_s1 + $0x40] sm:$0xff]  ;;  %v661_v18 = vld [vmem:[%s1096_s1 + $0x158] sm:$0xff]  ;;  %v676_v20 = vld [vmem:[%s1096_s1 + $0x1d0] sm:$0xff] }
  0x12   : > { %219 = vmatpush.msra.mxu0 %v212_v3  ;;  %256 = vmatpush.msra.mxu1 %v649_v16  ;;  %v207_v21 = vld [vmem:[%s1096_s1 + $0x38] sm:$0xff]  ;;  %v660_v22 = vld [vmem:[%s1096_s1 + $0x150] sm:$0xff]  ;;  %v647_v23 = vld [vmem:[%s1096_s1 + $0xe8] sm:$0xff] }
  0x13   : > { %298 = vmatpush.msra.mxu2 %v663_v11  ;;  %339 = vmatpush.msra.mxu3 %v678_v12  ;;  %v675_v24 = vld [vmem:[%s1096_s1 + $0x1c8] sm:$0xff]  ;;  %v206_v25 = vld [vmem:[%s1096_s1 + $0x30] sm:$0xff]  ;;  %v646_v27 = vld [vmem:[%s1096_s1 + $0xe0] sm:$0xff] }
  0x14   : > { %220 = vmatpush.msra.mxu0 %v211_v6  ;;  %257 = vmatpush.msra.mxu1 %v648_v19  ;;  %v659_v26 = vld [vmem:[%s1096_s1 + $0x148] sm:$0xff]  ;;  %v674_v28 = vld [vmem:[%s1096_s1 + $0x1c0] sm:$0xff]  ;;  %v645_v31 = vld [vmem:[%s1096_s1 + $0xd8] sm:$0xff] }
  0x15   : > { %299 = vmatpush.msra.mxu2 %v662_v14  ;;  %340 = vmatpush.msra.mxu3 %v677_v15  ;;  %v205_v29 = vld [vmem:[%s1096_s1 + $0x28] sm:$0xff]  ;;  %v658_v30 = vld [vmem:[%s1096_s1 + $0x140] sm:$0xff]  ;;  %v673_v32 = vld [vmem:[%s1096_s1 + $0x1b8] sm:$0xff] }
  0x16   : > { %221 = vmatpush.msra.mxu0 %v210_v10  ;;  %258 = vmatpush.msra.mxu1 %v647_v23  ;;  %v204_v33 = vld [vmem:[%s1096_s1 + $0x20] sm:$0xff]  ;;  %v657_v34 = vld [vmem:[%s1096_s1 + $0x138] sm:$0xff]  ;;  %v644_v35 = vld [vmem:[%s1096_s1 + $0xd0] sm:$0xff] }
  0x17   : > { %300 = vmatpush.msra.mxu2 %v661_v18  ;;  %341 = vmatpush.msra.mxu3 %v676_v20  ;;  %v672_v36 = vld [vmem:[%s1096_s1 + $0x1b0] sm:$0xff]  ;;  %v203_v37 = vld [vmem:[%s1096_s1 + $0x18] sm:$0xff]  ;;  %v643_v39 = vld [vmem:[%s1096_s1 + $0xc8] sm:$0xff] }
  0x18   : > { %222 = vmatpush.msra.mxu0 %v209_v13  ;;  %259 = vmatpush.msra.mxu1 %v646_v27  ;;  %v656_v38 = vld [vmem:[%s1096_s1 + $0x130] sm:$0xff]  ;;  %v671_v40 = vld [vmem:[%s1096_s1 + $0x1a8] sm:$0xff]  ;;  %v642_v43 = vld [vmem:[%s1096_s1 + $0xc0] sm:$0xff] }
  0x19   : > { %301 = vmatpush.msra.mxu2 %v660_v22  ;;  %342 = vmatpush.msra.mxu3 %v675_v24  ;;  %v202_v41 = vld [vmem:[%s1096_s1 + $0x10] sm:$0xff]  ;;  %v655_v42 = vld [vmem:[%s1096_s1 + $0x128] sm:$0xff]  ;;  %v670_v44 = vld [vmem:[%s1096_s1 + $0x1a0] sm:$0xff] }
  0x1a   : > { %223 = vmatpush.msra.mxu0 %v208_v17  ;;  %260 = vmatpush.msra.mxu1 %v645_v31  ;;  %v201_v45 = vld [vmem:[%s1096_s1 + $0x8] sm:$0xff]  ;;  %v654_v46 = vld [vmem:[%s1096_s1 + $0x120] sm:$0xff]  ;;  %v641_v47 = vld [vmem:[%s1096_s1 + $0xb8] sm:$0xff] }
  0x1b   : > { %302 = vmatpush.msra.mxu2 %v659_v26  ;;  %343 = vmatpush.msra.mxu3 %v674_v28  ;;  %v669_v48 = vld [vmem:[%s1096_s1 + $0x198] sm:$0xff]  ;;  %v200_v49 = vld [vmem:[%s1096_s1] sm:$0xff]  ;;  %v640_v51 = vld [vmem:[%s1096_s1 + $0xb0] sm:$0xff] }
  0x1c   : > { %224 = vmatpush.msra.mxu0 %v207_v21  ;;  %261 = vmatpush.msra.mxu1 %v644_v35  ;;  %v653_v50 = vld [vmem:[%s1096_s1 + $0x118] sm:$0xff]  ;;  %v668_v53 = vld [vmem:[%s1096_s1 + $0x190] sm:$0xff]  ;;  %v938_v54 = vld [vmem:[%s917_s21] sm:$0xff] }
  0x1d   : > { %303 = vmatpush.msra.mxu2 %v658_v30  ;;  %344 = vmatpush.msra.mxu3 %v673_v32  ;;  %v697_v52 = vld [vmem:[%s1096_s1 + $0x278] sm:$0xff]  ;;  %v652_v55 = vld [vmem:[%s1096_s1 + $0x110] sm:$0xff]  ;;  %v667_v57 = vld [vmem:[%s1096_s1 + $0x188] sm:$0xff] }
  0x1e   : > { %225 = vmatpush.msra.mxu0 %v206_v25  ;;  %262 = vmatpush.msra.mxu1 %v643_v39  ;;  %v696_v56 = vld [vmem:[%s1096_s1 + $0x270] sm:$0xff]  ;;  %v651_v58 = vld [vmem:[%s1096_s1 + $0x108] sm:$0xff]  ;;  %v666_v61 = vld [vmem:[%s1096_s1 + $0x180] sm:$0xff] }
  0x1f   : > { %304 = vmatpush.msra.mxu2 %v657_v34  ;;  %345 = vmatpush.msra.mxu3 %v672_v36  ;;  %v639_v59 = vld [vmem:[%s1096_s1 + $0xa8] sm:$0xff]  ;;  %v650_v62 = vld [vmem:[%s1096_s1 + $0x100] sm:$0xff]  ;;  %v693_v1 = vld [vmem:[%s1096_s1 + $0x258] sm:$0xff] }
  0x20   : > { %226 = vmatpush.msra.mxu0 %v205_v29  ;;  %263 = vmatpush.msra.mxu1 %v642_v43  ;;  %v695_v60 = vld [vmem:[%s1096_s1 + $0x268] sm:$0xff]  ;;  %v694_v63 = vld [vmem:[%s1096_s1 + $0x260] sm:$0xff]  ;;  %v637_v3 = vld [vmem:[%s1096_s1 + $0x98] sm:$0xff] }
  0x21   : > { %305 = vmatpush.msra.mxu2 %v656_v38  ;;  %346 = vmatpush.msra.mxu3 %v671_v40  ;;  %v638_v0 = vld [vmem:[%s1096_s1 + $0xa0] sm:$0xff]  ;;  %v199_v2 = vld [vmem:[%s917_s21 + $0x8] sm:$0xff]  ;;  %v692_v4 = vld [vmem:[%s1096_s1 + $0x250] sm:$0xff] }
  0x22   : > { %227 = vmatpush.msra.mxu0 %v204_v33  ;;  %264 = vmatpush.msra.mxu1 %v641_v47  ;;  %v636_v5 = vld [vmem:[%s1096_s1 + $0x90] sm:$0xff]  ;;  %v691_v6 = vld [vmem:[%s1096_s1 + $0x248] sm:$0xff]  ;;  %v690_v8 = vld [vmem:[%s1096_s1 + $0x240] sm:$0xff] }
  0x23   : > { %306 = vmatpush.msra.mxu2 %v655_v42  ;;  %347 = vmatpush.msra.mxu3 %v670_v44  ;;  %v635_v7 = vld [vmem:[%s1096_s1 + $0x88] sm:$0xff]  ;;  %v634_v9 = vld [vmem:[%s1096_s1 + $0x80] sm:$0xff]  ;;  %v689_v10 = vld [vmem:[%s1096_s1 + $0x238] sm:$0xff] }
  0x24   : > { %228 = vmatpush.msra.mxu0 %v203_v37  ;;  %265 = vmatpush.msra.mxu1 %v640_v51  ;;  %v688_v11 = vld [vmem:[%s1096_s1 + $0x230] sm:$0xff]  ;;  %v687_v12 = vld [vmem:[%s1096_s1 + $0x228] sm:$0xff]  ;;  %v686_v13 = vld [vmem:[%s1096_s1 + $0x220] sm:$0xff] }
  0x25   : > { %307 = vmatpush.msra.mxu2 %v654_v46  ;;  %348 = vmatpush.msra.mxu3 %v669_v48  ;;  %v685_v14 = vld [vmem:[%s1096_s1 + $0x218] sm:$0xff]  ;;  %v684_v15 = vld [vmem:[%s1096_s1 + $0x210] sm:$0xff]  ;;  %v683_v16 = vld [vmem:[%s1096_s1 + $0x208] sm:$0xff] }
  0x26   : > { %229 = vmatpush.msra.mxu0 %v202_v41  ;;  %266 = vmatpush.msra.mxu1 %v639_v59  ;;  %v682_v17 = vld [vmem:[%s1096_s1 + $0x200] sm:$0xff]  ;;  %v460_v28 = vld [vmem:[%s1098_s3 + $0x78] sm:$0xff]  ;;  %v459_v29 = vld [vmem:[%s1098_s3 + $0x70] sm:$0xff] }
  0x27   : > { %308 = vmatpush.msra.mxu2 %v653_v50  ;;  %349 = vmatpush.msra.mxu3 %v668_v53  ;;  %v458_v30 = vld [vmem:[%s1098_s3 + $0x68] sm:$0xff]  ;;  %v457_v31 = vld [vmem:[%s1098_s3 + $0x60] sm:$0xff]  ;;  %v456_v33 = vld [vmem:[%s1098_s3 + $0x58] sm:$0xff] }
  0x28   : > { %230 = vmatpush.msra.mxu0 %v201_v45  ;;  %267 = vmatpush.msra.mxu1 %v638_v0  ;;  %v399_v32 = vld [vmem:[%s1097_s2] sm:$0xff]  ;;  %v455_v34 = vld [vmem:[%s1098_s3 + $0x50] sm:$0xff]  ;;  %v454_v35 = vld [vmem:[%s1098_s3 + $0x48] sm:$0xff] }
  0x29   : > { %309 = vmatpush.msra.mxu2 %v652_v55  ;;  %350 = vmatpush.msra.mxu3 %v667_v57  ;;  %v453_v36 = vld [vmem:[%s1098_s3 + $0x40] sm:$0xff]  ;;  %v400_v37 = vld [vmem:[%s1097_s2 + $0x8] sm:$0xff]  ;;  %v452_v38 = vld [vmem:[%s1098_s3 + $0x38] sm:$0xff] }
  0x2a   : > { %231 = vmatpush.msra.mxu0 %v200_v49  ;;  %268 = vmatpush.msra.mxu1 %v637_v3  ;;  %v451_v39 = vld [vmem:[%s1098_s3 + $0x30] sm:$0xff]  ;;  %v450_v40 = vld [vmem:[%s1098_s3 + $0x28] sm:$0xff]  ;;  %v449_v41 = vld [vmem:[%s1098_s3 + $0x20] sm:$0xff] }
  0x2b   : > { %232 = vmatmul.f32.vlgmr.msra.gmra.mxu0 %v938_v54  ;;  %310 = vmatpush.msra.mxu2 %v651_v58  ;;  %v401_v42 = vld [vmem:[%s1097_s2 + $0x10] sm:$0xff]  ;;  %v448_v43 = vld [vmem:[%s1098_s3 + $0x18] sm:$0xff]  ;;  %v446_v45 = vld [vmem:[%s1098_s3 + $0x8] sm:$0xff] }
  0x2c   : > { %376 = vmatpush.msrb.mxu0 %v697_v52  ;;  %351 = vmatpush.msra.mxu3 %v666_v61  ;;  %v447_v44 = vld [vmem:[%s1098_s3 + $0x10] sm:$0xff]  ;;  %v402_v46 = vld [vmem:[%s1097_s2 + $0x18] sm:$0xff]  ;;  %v445_v47 = vld [vmem:[%s1098_s3] sm:$0xff] }
  0x2d   : > { %352 = vmatmul.f32.vlgmr.msra.gmra.mxu3 %v938_v54  ;;  %311 = vmatpush.msra.mxu2 %v650_v62 }
  0x2e   : > { %377 = vmatpush.msrb.mxu0 %v696_v56  ;;  %312 = vmatmul.f32.vlgmr.msra.gmra.mxu2 %v938_v54 }
  0x2f   : > { %269 = vmatpush.msra.mxu1 %v636_v5  ;;  %461 = vmatpush.msrb.mxu2 %v460_v28 }
  0x30   : > { %378 = vmatpush.msrb.mxu0 %v695_v60  ;;  %503 = vmatpush.msrb.mxu3 %v460_v28 }
  0x31   : > { %270 = vmatpush.msra.mxu1 %v635_v7  ;;  %462 = vmatpush.msrb.mxu2 %v459_v29 }
  0x32   : > { %379 = vmatpush.msrb.mxu0 %v694_v63  ;;  %504 = vmatpush.msrb.mxu3 %v459_v29 }
  0x33   : > { %235 = vmatmul.f32.gmra.mxu0 %v199_v2  ;;  %271 = vmatpush.msra.mxu1 %v634_v9 }
  0x34   : > { %380 = vmatpush.msrb.mxu0 %v693_v1  ;;  %272 = vmatmul.f32.vlgmr.msra.gmra.mxu1 %v938_v54 }
  0x35   : > { %355 = vmatmul.f32.gmra.mxu3 %v199_v2  ;;  %463 = vmatpush.msrb.mxu2 %v458_v30 }
  0x36   : > { %381 = vmatpush.msrb.mxu0 %v692_v4  ;;  %315 = vmatmul.f32.gmra.mxu2 %v199_v2 }
  0x37   : > { %505 = vmatpush.msrb.mxu3 %v458_v30  ;;  %464 = vmatpush.msrb.mxu2 %v457_v31 }
  0x38   : > { %382 = vmatpush.msrb.mxu0 %v691_v6 }
  0x39   : > { %506 = vmatpush.msrb.mxu3 %v457_v31  ;;  %465 = vmatpush.msrb.mxu2 %v456_v33 }
  0x3a   : > { %383 = vmatpush.msrb.mxu0 %v690_v8 }
  0x3b   : > { %507 = vmatpush.msrb.mxu3 %v456_v33  ;;  %466 = vmatpush.msrb.mxu2 %v455_v34 }
  0x3c   : > { %384 = vmatpush.msrb.mxu0 %v689_v10  ;;  %275 = vmatmul.f32.gmra.mxu1 %v199_v2 }
  0x3d   : > { %508 = vmatpush.msrb.mxu3 %v455_v34  ;;  %467 = vmatpush.msrb.mxu2 %v454_v35 }
  0x3e   : > { %385 = vmatpush.msrb.mxu0 %v688_v11 }
  0x3f   : > { %509 = vmatpush.msrb.mxu3 %v454_v35  ;;  %468 = vmatpush.msrb.mxu2 %v453_v36 }
  0x40   : > { %386 = vmatpush.msrb.mxu0 %v687_v12 }
  0x41   : > { %510 = vmatpush.msrb.mxu3 %v453_v36  ;;  %469 = vmatpush.msrb.mxu2 %v452_v38 }
  0x42   : > { %387 = vmatpush.msrb.mxu0 %v686_v13 }
  0x43   : > { %511 = vmatpush.msrb.mxu3 %v452_v38  ;;  %470 = vmatpush.msrb.mxu2 %v451_v39 }
  0x44   : > { %388 = vmatpush.msrb.mxu0 %v685_v14 }
  0x45   : > { %512 = vmatpush.msrb.mxu3 %v451_v39  ;;  %471 = vmatpush.msrb.mxu2 %v450_v40 }
  0x46   : > { %389 = vmatpush.msrb.mxu0 %v684_v15 }
  0x47   : > { %513 = vmatpush.msrb.mxu3 %v450_v40  ;;  %472 = vmatpush.msrb.mxu2 %v449_v41 }
  0x48   : > { %390 = vmatpush.msrb.mxu0 %v683_v16 }
  0x49   : > { %514 = vmatpush.msrb.mxu3 %v449_v41  ;;  %473 = vmatpush.msrb.mxu2 %v448_v43 }
  0x4a   : > { %391 = vmatpush.msrb.mxu0 %v682_v17 }
  0x4b   : > { %392 = vmatmul.f32.vlgmr.msrb.gmra.mxu0 %v938_v54  ;;  %515 = vmatpush.msrb.mxu3 %v448_v43 }
  0x4c   : > { %474 = vmatpush.msrb.mxu2 %v447_v44 }
  0x4d   : > { %516 = vmatpush.msrb.mxu3 %v447_v44 }
  0x4e   : > { %475 = vmatpush.msrb.mxu2 %v446_v45 }
  0x4f   : > { %517 = vmatpush.msrb.mxu3 %v446_v45 }
  0x50   : > { %476 = vmatpush.msrb.mxu2 %v445_v47 }
  0x51   : > { %518 = vmatpush.msrb.mxu3 %v445_v47 }
  0x53   : > { %395 = vmatmul.f32.gmra.mxu0 %v199_v2 }
  0xa8   : > { %v233_v18 = vpop.f32.mrf.mxu0 }
  0xb0   : > { %v236_v19 = vpop.f32.mrf.mxu0  ;;  %v353_v21 = vpop.f32.mrf.mxu3 }
  0xb1   : > { %v313_v22 = vpop.f32.mrf.mxu2  ;;  %v273_v24 = vpop.f32.mrf.mxu1 }
  0xb8   : > { %v356_v25 = vpop.f32.mrf.mxu3 }
  0xb9   : > { %v316_v26 = vpop.f32.mrf.mxu2  ;;  %v276_v27 = vpop.f32.mrf.mxu1 }
  0xc8   : > { %v393_v20 = vpop.f32.mrf.mxu0 }
  0xd0   : > { %v396_v23 = vpop.f32.mrf.mxu0 }
  0xd1   : > { %422 = vmatpush.msrb.mxu1 %v396_v23 }
  0xd3   : > { %423 = vmatpush.msrb.mxu1 %v393_v20 }
  0xd5   : > { %424 = vmatpush.msrb.mxu1 %v356_v25 }
  0xd7   : > { %425 = vmatpush.msrb.mxu1 %v353_v21 }
  0xd9   : > { %426 = vmatpush.msrb.mxu1 %v316_v26 }
  0xdb   : > { %427 = vmatpush.msrb.mxu1 %v313_v22 }
  0xdd   : > { %428 = vmatpush.msrb.mxu1 %v276_v27 }
  0xdf   : > { %429 = vmatpush.msrb.mxu1 %v273_v24 }
  0xe1   : > { %430 = vmatpush.msrb.mxu1 %v236_v19 }
  0xe3   : > { %431 = vmatpush.msrb.mxu1 %v233_v18 }
  0xe4   : > { %698 = vmatmul.msk.f32.vlgmr.msrb.gmra.mxu1 %vm403_vm0, %v399_v32 }
  0xec   : > { %699 = vmatmul.msk.f32.gmra.mxu1 %vm403_vm0, %v400_v37 }
  0xf4   : > { %700 = vmatmul.msk.f32.gmra.mxu1 %vm403_vm0, %v401_v42 }
  0xfc   : > { %701 = vmatmul.msk.f32.gmra.mxu1 %vm403_vm0, %v402_v46 }
 0x161   : > { %v433_v48 = vpop.f32.mrf.mxu1 }
 0x162   : > { %v499_v49 = vmul.f32 %v433_v48, %v433_v48  ;;  %477 = vmatmul.f32.vlgmr.msrb.gmra.mxu2 %v433_v48 }
 0x164   : > { %519 = vmatmul.f32.vlgmr.msrb.gmra.mxu3 %v499_v49 }
 0x169   : > { %v436_v50 = vpop.f32.mrf.mxu1 }
 0x16a   : > { %480 = vmatmul.f32.gmra.mxu2 %v436_v50  ;;  %v500_v51 = vmul.f32 %v436_v50, %v436_v50 }
 0x16c   : > { %522 = vmatmul.f32.gmra.mxu3 %v500_v51 }
 0x171   : > { %v439_v52 = vpop.f32.mrf.mxu1 }
 0x172   : > { %483 = vmatmul.f32.gmra.mxu2 %v439_v52  ;;  %v501_v53 = vmul.f32 %v439_v52, %v439_v52 }
 0x174   : > { %525 = vmatmul.f32.gmra.mxu3 %v501_v53 }
 0x179   : > { %v442_v54 = vpop.f32.mrf.mxu1 }
 0x17a   : > { %486 = vmatmul.f32.gmra.mxu2 %v442_v54  ;;  %v502_v55 = vmul.f32 %v442_v54, %v442_v54 }
 0x17c   : > { %528 = vmatmul.f32.gmra.mxu3 %v502_v55 }
 0x1e5   : > { %v478_v56 = vpop.f32.mrf.mxu2 }
 0x1e7   : > { %v520_v57 = vpop.f32.mrf.mxu3 }
 0x1ed   : > { %v481_v58 = vpop.f32.mrf.mxu2 }
 0x1ee   : > { %v490_v62 = vadd.f32 %v481_v58, %v478_v56 }
 0x1ef   : > { %v523_v59 = vpop.f32.mrf.mxu3 }
 0x1f0   : > { %v532_v63 = vadd.f32 %v523_v59, %v520_v57 }
 0x1f5   : > { %v484_v60 = vpop.f32.mrf.mxu2 }
 0x1f6   : > { %v491_v0 = vadd.f32 %v490_v62, %v484_v60 }
 0x1f7   : > { %v526_v61 = vpop.f32.mrf.mxu3 }
 0x1f8   : > { %v533_v2 = vadd.f32 %v532_v63, %v526_v61 }
 0x1fd   : > { %v487_v1 = vpop.f32.mrf.mxu2 }
 0x1fe   : > { %v492_v3 = vadd.f32 %v491_v0, %v487_v1 }
 0x1ff   : > { %v529_v4 = vpop.f32.mrf.mxu3 }
 0x200   : > { %v493_v5 = vrot.slane %v492_v3, 4  ;;  %v534_v6 = vadd.f32 %v533_v2, %v529_v4 }
 0x202   : > { %v494_v7 = vadd.f32 %v493_v5, %v492_v3  ;;  %v535_v8 = vrot.slane %v534_v6, 4 }
 0x204   : > { %v495_v9 = vrot.slane %v494_v7, 2  ;;  %v536_v10 = vadd.f32 %v535_v8, %v534_v6 }
 0x206   : > { %v496_v11 = vadd.f32 %v495_v9, %v494_v7  ;;  %v537_v12 = vrot.slane %v536_v10, 2 }
 0x208   : > { %v497_v13 = vrot.slane %v496_v11, 1  ;;  %v538_v14 = vadd.f32 %v537_v12, %v536_v10 }
 0x20a   : > { %v498_v15 = vadd.f32 %v497_v13, %v496_v11  ;;  %v539_v16 = vrot.slane %v538_v14, 1 }
 0x20c   : > { %v540_v17 = vadd.f32 %v539_v16, %v538_v14  ;;  %v541_v18 = vmul.f32 %v498_v15, %v498_v15  ;;  %v543_v27 = vsub.f32 %v433_v48, %v498_v15  ;;  %v544_v28 = vsub.f32 %v436_v50, %v498_v15 }
 0x20d   : > { %v545_v29 = vsub.f32 %v439_v52, %v498_v15  ;;  %v546_v30 = vsub.f32 %v442_v54, %v498_v15 }
 0x20e   : > { %v542_v19 = vsub.f32 %v540_v17, %v541_v18 }
 0x210   : > { %v547_v20 = vadd.f32 1e-05, %v542_v19 }
 0x212   : > { %714 = vrsqrt.f32 %v547_v20  ;;  %vm554_vm2 = vweird.f32 %v547_v20 }
 0x218   : > { %v715_v21 = vpop.eup %714 }
 0x219   : > { %v549_v22 = vmul.f32 %v715_v21, %v547_v20  ;;  %vm555_vm1 = vweird.f32 %v715_v21 }
 0x21a   : > { %vm556_vm3 = vmor %vm554_vm2, %vm555_vm1 }
 0x21b   : > { %v550_v23 = vmul.f32 %v715_v21, %v549_v22 }
 0x21d   : > { %v551_v24 = vmul.f32 0.5, %v550_v23 }
 0x21f   : > { %v552_v25 = vsub.f32 1.5, %v551_v24 }
 0x221   : > { %v553_v26 = vmul.f32 %v715_v21, %v552_v25 }
 0x223   : > { %v557_v31 = vsel %vm556_vm3, %v715_v21, %v553_v26 }
 0x224   : > { %v558_v32 = vmul.f32 %v557_v31, %v543_v27  ;;  %v559_v33 = vmul.f32 %v557_v31, %v544_v28  ;;  %v560_v34 = vmul.f32 %v557_v31, %v545_v29  ;;  %v561_v35 = vmul.f32 %v557_v31, %v546_v30 }
 0x226   : > { %v562_v36 = vmax.f32 %v558_v32, 0.0  ;;  %v563_v37 = vmax.f32 %v559_v33, 0.0  ;;  %v564_v38 = vmax.f32 %v560_v34, 0.0  ;;  %v565_v39 = vmax.f32 %v561_v35, 0.0 }
 0x228   : > { %566 = vst [vmem:[%s197_s8] sm:$0xff] %v562_v36 }
 0x229   : > { %567 = vst [vmem:[%s197_s8 + $0x8] sm:$0xff] %v563_v37 }
 0x22a   : > { %568 = vst [vmem:[%s197_s8 + $0x10] sm:$0xff] %v564_v38 }
 0x22b   : > { %569 = vst [vmem:[%s197_s8 + $0x18] sm:$0xff] %v565_v39 }
 0x22c PF: > { %s14_s15 = sadd.s32 1, %s722_s15  }
 0x22d   : > { %p11_p4 = scmp.ge.s32.totalorder %s14_s15, 4  }
 0x22f   :  { %13 = sbr.rel (!%p11_p4) target bundleno = 1 (0x1), region = 70 }

</bundles_post_ra>
